<compile_context>
chip_gen: v7x
topology: tpu7x:2x2x1
jax: 0.10.0
libtpu: 0.0.40
codegen_flags: <defaults>
</compile_context>

<pallas_src>
import jax
import jax.numpy as jnp
import numpy as np
from jax.experimental import pallas as pl
from jax.experimental.pallas import tpu as pltpu

_EPS = 1e-5


# ----------------------------------------------------------------------------
# Kernel
# ----------------------------------------------------------------------------
def _attention_block_kernel(g_ref,    # (F_g, TN)        stream dtype
                            x_ref,    # (F_l, TN)        stream dtype
                            wg_ref,   # (F_int_p, F_g)   stream dtype (BN-folded)
                            wx_ref,   # (F_int_p, F_l)   stream dtype (BN-folded)
                            b_ref,    # (F_int_p, 1)     f32 folded bias (bg + bx)
                            wp_ref,   # (F_int_p, 1)     f32 folded psi weight (column)
                            bp_ref,   # (1, 1)           f32 folded psi bias
                            out_ref): # (F_l, TN)        stream dtype
    # Fused W_g / W_x branches: two MXU pushes, f32 accumulation, lane-dense
    # f32 epilogue (works on v5e too, which has no bf16 VPU/EUP).
    s = (jnp.dot(wg_ref[...], g_ref[...], preferred_element_type=jnp.float32)
         + jnp.dot(wx_ref[...], x_ref[...], preferred_element_type=jnp.float32)
         + b_ref[...])
    s = jnp.maximum(s, 0.0)                                  # (F_int_p, TN) f32

    # psi branch: 1-row 1x1 conv done as VPU multiply + sublane (XLU) reduce
    # instead of a 1-row MXU push; padded F_int rows are zero so they drop out.
    p = jnp.sum(s * wp_ref[...], axis=0, keepdims=True) + bp_ref[...]   # (1, TN)
    psi = pl.reciprocal(1.0 + jnp.exp(-p), approx=True)      # sigmoid via EUP

    # Gate the skip connection (psi broadcasts across channel sublanes).
    out_ref[...] = (x_ref[...].astype(jnp.float32) * psi).astype(out_ref.dtype)


# ----------------------------------------------------------------------------
# Tiling helper
# ----------------------------------------------------------------------------
def _pick_tn(n, f_g, f_l, f_int, stream_bytes):
    """Lane-tile width: as big as a conservative VMEM budget allows,
    multiple of 128, >= 512 when the image is large enough."""
    # Streamed tiles (double-buffered g, x, out) + f32 intermediates per lane.
    per_lane = 2 * (f_g + 2 * f_l) * stream_bytes + (f_int + 2 * f_l) * 4
    budget = 24 * 1024 * 1024          # safe on v5e scoped default / v7x 64 MiB
    tn = budget // max(per_lane, 1)
    tn = int(max(512, min(tn, 8192)))
    tn = (tn // 128) * 128
    return n if n <= tn else tn


# ----------------------------------------------------------------------------
# Wrapper
# ----------------------------------------------------------------------------
def attention_block_forward(g_nchw, x_nchw, p):
    """g: (B, F_g, H, W), x: (B, F_l, H, W) -> (B, F_l, H, W).

    Streaming dtype (f32 or bf16) is taken from the folded weights."""
    B, F_g, H, W = g_nchw.shape
    _, F_l, _, _ = x_nchw.shape
    F_int_p = p["wg"].shape[0]
    N = H * W
    stream_dtype = p["wg"].dtype

    # Channels-on-sublanes, spatial-on-lanes: free reshapes, no transposes,
    # no concat -- g and x are streamed exactly once each.
    g2 = g_nchw.reshape(B, F_g, N).astype(stream_dtype)
    x2 = x_nchw.reshape(B, F_l, N).astype(stream_dtype)

    TN = _pick_tn(N, F_g, F_l, F_int_p, jnp.dtype(stream_dtype).itemsize)
    num_n = pl.cdiv(N, TN)

    def const_spec(shape):
        return pl.BlockSpec(shape, lambda b, n: (0,) * len(shape))

    out = pl.pallas_call(
        _attention_block_kernel,
        out_shape=jax.ShapeDtypeStruct((B, F_l, N), stream_dtype),
        grid_spec=pltpu.PrefetchScalarGridSpec(
            num_scalar_prefetch=0,
            grid=(B, num_n),
            in_specs=[
                pl.BlockSpec((None, F_g, TN), lambda b, n: (b, 0, n)),
                pl.BlockSpec((None, F_l, TN), lambda b, n: (b, 0, n)),
                const_spec((F_int_p, F_g)),
                const_spec((F_int_p, F_l)),
                const_spec((F_int_p, 1)),
                const_spec((F_int_p, 1)),
                const_spec((1, 1)),
            ],
            out_specs=pl.BlockSpec((None, F_l, TN), lambda b, n: (b, 0, n)),
        ),
        compiler_params=pltpu.CompilerParams(
            dimension_semantics=("parallel", "parallel"),
            vmem_limit_bytes=64 * 1024 * 1024),
    )(g2, x2, p["wg"], p["wx"], p["b"], p["wp"], p["bp"])

    return out.reshape(B, F_l, H, W)


# ----------------------------------------------------------------------------
# Deterministic parameter init (PyTorch-like) + BN folding
# ----------------------------------------------------------------------------
def init_raw_params(key, f_g, f_l, f_int):
    ks = jax.random.split(key, 18)

    def u(k, shape, fan_in):
        bound = 1.0 / np.sqrt(fan_in)
        return jax.random.uniform(k, shape, jnp.float32, -bound, bound)

    def bn(kg, kb, km, kv, c):
        gamma = 1.0 + 0.1 * jax.random.normal(kg, (c,), jnp.float32)
        beta = 0.1 * jax.random.normal(kb, (c,), jnp.float32)
        mean = 0.1 * jax.random.normal(km, (c,), jnp.float32)
        var = 1.0 + 0.1 * jax.random.uniform(kv, (c,), jnp.float32)
        return gamma, beta, mean, var

    return dict(
        wg=u(ks[0], (f_int, f_g), f_g), cbg=u(ks[1], (f_int,), f_g),
        bng=bn(ks[2], ks[3], ks[4], ks[5], f_int),
        wx=u(ks[6], (f_int, f_l), f_l), cbx=u(ks[7], (f_int,), f_l),
        bnx=bn(ks[8], ks[9], ks[10], ks[11], f_int),
        wp=u(ks[12], (1, f_int), f_int), cbp=u(ks[13], (1,), f_int),
        bnp=bn(ks[14], ks[15], ks[16], ks[17], 1),
    )


def _pad_rows(a, m):
    pad = (-a.shape[0]) % m
    if pad:
        a = jnp.concatenate([a, jnp.zeros((pad,) + a.shape[1:], a.dtype)], axis=0)
    return a


def fold_params(raw, stream_dtype=jnp.float32):
    """Fold conv bias + inference BatchNorm into the weights / bias columns.
    Streamed weights are cast to `stream_dtype`; biases and the psi column
    stay f32 (they live in the f32 epilogue)."""
    def fold(conv_b, bn_params):
        gamma, beta, mean, var = bn_params
        scale = gamma / jnp.sqrt(var + _EPS)
        bias = (conv_b - mean) * scale + beta
        return scale.reshape(-1, 1), bias.reshape(-1, 1)

    sg, bg = fold(raw["cbg"], raw["bng"])
    sx, bx = fold(raw["cbx"], raw["bnx"])
    sp, bp = fold(raw["cbp"], raw["bnp"])

    wg = raw["wg"] * sg                       # (F_int, F_g)
    wx = raw["wx"] * sx                       # (F_int, F_l)
    b = bg + bx                               # (F_int, 1)
    wp = (raw["wp"] * sp).reshape(-1, 1)      # (F_int, 1)  column for VPU reduce

    # Pad F_int to a sublane multiple; padded rows are zero so results are
    # unaffected (relu(0)=0 contributes 0 to the psi reduce).
    wg, wx, b, wp = (_pad_rows(a, 8) for a in (wg, wx, b, wp))

    return dict(
        wg=wg.astype(stream_dtype), wx=wx.astype(stream_dtype),
        b=b.astype(jnp.float32), wp=wp.astype(jnp.float32),
        bp=bp.astype(jnp.float32),
    )


# ----------------------------------------------------------------------------
# Pure-JAX reference (inference-mode BN) for correctness check
# ----------------------------------------------------------------------------
def ref_forward(g, x, raw):
    def conv1x1(inp, w, b):  # inp (B,C,H,W), w (Cout,Cin)
        return jnp.einsum("oc,bchw->bohw", w, inp) + b[None, :, None, None]

    def bn(y, bn_params):
        gamma, beta, mean, var = bn_params
        inv = (gamma / jnp.sqrt(var + _EPS))[None, :, None, None]
        return (y - mean[None, :, None, None]) * inv + beta[None, :, None, None]

    g1 = bn(conv1x1(g, raw["wg"], raw["cbg"]), raw["bng"])
    x1 = bn(conv1x1(x, raw["wx"], raw["cbx"]), raw["bnx"])
    s = jax.nn.relu(g1 + x1)
    psi = jax.nn.sigmoid(bn(conv1x1(s, raw["wp"], raw["cbp"]), raw["bnp"]))
    return x * psi


# ----------------------------------------------------------------------------
if __name__ == "__main__":
    B, F_g, F_l, F_int, H, W = 2, 4, 4, 8, 16, 16

    key = jax.random.PRNGKey(0)
    kg, kx, kp = jax.random.split(key, 3)
    g = jax.random.normal(kg, (B, F_g, H, W), jnp.float32)
    x = jax.random.normal(kx, (B, F_l, H, W), jnp.float32)

    raw = init_raw_params(kp, F_g, F_l, F_int)
    ref = np.asarray(jax.block_until_ready(ref_forward(g, x, raw)))

    # f32 streaming path (tight tolerance; approx-reciprocal error is relative).
    p32 = fold_params(raw, jnp.float32)
    out32 = jax.block_until_ready(attention_block_forward(g, x, p32))
    assert out32.shape == (B, F_l, H, W), out32.shape
    o32 = np.asarray(out32)
    if not np.allclose(o32, ref, rtol=5e-3, atol=1e-4):
        raise AssertionError(
            f"f32 mismatch, max_err={float(np.max(np.abs(o32 - ref)))}")

    # bf16 streaming path (halves HBM bytes; MXU/f32 accumulation preserved).
    p16 = fold_params(raw, jnp.bfloat16)
    out16 = jax.block_until_ready(
        attention_block_forward(g.astype(jnp.bfloat16),
                                x.astype(jnp.bfloat16), p16))
    o16 = np.asarray(out16.astype(jnp.float32))
    if not np.allclose(o16, ref, rtol=3e-2, atol=3e-2):
        raise AssertionError(
            f"bf16 mismatch, max_err={float(np.max(np.abs(o16 - ref)))}")

    print("KERNEL_OK")
</pallas_src>

<mosaic_0001>
module attributes {stable_mosaic.version = 11 : i64} {
  func.func @_attention_block_kernel(%arg0: i32, %arg1: i32, %arg2: memref<1x4x256xf32, #tpu.memory_space<vmem>>, %arg3: memref<1x4x256xf32, #tpu.memory_space<vmem>>, %arg4: memref<8x4xf32, #tpu.memory_space<vmem>>, %arg5: memref<8x4xf32, #tpu.memory_space<vmem>>, %arg6: memref<8x1xf32, #tpu.memory_space<vmem>>, %arg7: memref<8x1xf32, #tpu.memory_space<vmem>>, %arg8: memref<1x1xf32, #tpu.memory_space<vmem>>, %arg9: memref<1x4x256xf32, #tpu.memory_space<vmem>>) attributes {dimension_semantics = [#tpu.dimension_semantics<parallel>, #tpu.dimension_semantics<parallel>], iteration_bounds = array<i64: 2, 1>, scalar_prefetch = 0 : i64, scratch_operands = 0 : i64, tpu.core_type = #tpu.core_type<tc>, window_params = [{transform_indices = @transform_0, window_bounds = array<i64: 1, 4, 256>}, {transform_indices = @transform_1, window_bounds = array<i64: 1, 4, 256>}, {pipeline_mode = #tpu.pipeline_mode<synchronous>, transform_indices = @transform_2, window_bounds = array<i64: 8, 4>}, {pipeline_mode = #tpu.pipeline_mode<synchronous>, transform_indices = @transform_3, window_bounds = array<i64: 8, 4>}, {pipeline_mode = #tpu.pipeline_mode<synchronous>, transform_indices = @transform_4, window_bounds = array<i64: 8, 1>}, {pipeline_mode = #tpu.pipeline_mode<synchronous>, transform_indices = @transform_5, window_bounds = array<i64: 8, 1>}, {pipeline_mode = #tpu.pipeline_mode<synchronous>, transform_indices = @transform_6, window_bounds = array<i64: 1, 1>}, {transform_indices = @transform_7, window_bounds = array<i64: 1, 4, 256>}]} {
    %c0 = arith.constant 0 : index
    %c0_0 = arith.constant 0 : index
    %0 = vector.load %arg4[%c0, %c0_0] : memref<8x4xf32, #tpu.memory_space<vmem>>, vector<8x4xf32>
    %c0_1 = arith.constant 0 : index
    %c0_2 = arith.constant 0 : index
    %c0_3 = arith.constant 0 : index
    %1 = vector.load %arg2[%c0_1, %c0_2, %c0_3] : memref<1x4x256xf32, #tpu.memory_space<vmem>>, vector<1x4x256xf32>
    %2 = vector.shape_cast %1 : vector<1x4x256xf32> to vector<4x256xf32>
    %cst = arith.constant dense<0.000000e+00> : vector<8x256xf32>
    %3 = tpu.matmul %0, %2, %cst {dimension_numbers = #tpu.dot_dimension_numbers<[1], [0], [0], [1], [0, 0, 1, 1], [], []>} : vector<8x4xf32>, vector<4x256xf32>, vector<8x256xf32> -> vector<8x256xf32>
    %c0_4 = arith.constant 0 : index
    %c0_5 = arith.constant 0 : index
    %4 = vector.load %arg5[%c0_4, %c0_5] : memref<8x4xf32, #tpu.memory_space<vmem>>, vector<8x4xf32>
    %c0_6 = arith.constant 0 : index
    %c0_7 = arith.constant 0 : index
    %c0_8 = arith.constant 0 : index
    %5 = vector.load %arg3[%c0_6, %c0_7, %c0_8] : memref<1x4x256xf32, #tpu.memory_space<vmem>>, vector<1x4x256xf32>
    %6 = vector.shape_cast %5 : vector<1x4x256xf32> to vector<4x256xf32>
    %cst_9 = arith.constant dense<0.000000e+00> : vector<8x256xf32>
    %7 = tpu.matmul %4, %6, %cst_9 {dimension_numbers = #tpu.dot_dimension_numbers<[1], [0], [0], [1], [0, 0, 1, 1], [], []>} : vector<8x4xf32>, vector<4x256xf32>, vector<8x256xf32> -> vector<8x256xf32>
    %8 = arith.addf %3, %7 : vector<8x256xf32>
    %c0_10 = arith.constant 0 : index
    %c0_11 = arith.constant 0 : index
    %9 = vector.load %arg6[%c0_10, %c0_11] : memref<8x1xf32, #tpu.memory_space<vmem>>, vector<8x1xf32>
    %10 = vector.broadcast %9 : vector<8x1xf32> to vector<8x256xf32>
    %11 = arith.addf %8, %10 : vector<8x256xf32>
    %cst_12 = arith.constant 0.000000e+00 : f32
    %12 = vector.broadcast %cst_12 : f32 to vector<8x256xf32>
    %13 = arith.maximumf %11, %12 : vector<8x256xf32>
    %c0_13 = arith.constant 0 : index
    %c0_14 = arith.constant 0 : index
    %14 = vector.load %arg7[%c0_13, %c0_14] : memref<8x1xf32, #tpu.memory_space<vmem>>, vector<8x1xf32>
    %15 = vector.broadcast %14 : vector<8x1xf32> to vector<8x256xf32>
    %16 = arith.mulf %13, %15 : vector<8x256xf32>
    %cst_15 = arith.constant dense<0.000000e+00> : vector<256xf32>
    %17 = vector.multi_reduction <add>, %16, %cst_15 [0] : vector<8x256xf32> to vector<256xf32>
    %18 = vector.shape_cast %17 : vector<256xf32> to vector<1x256xf32>
    %c0_16 = arith.constant 0 : index
    %c0_17 = arith.constant 0 : index
    %19 = vector.load %arg8[%c0_16, %c0_17] : memref<1x1xf32, #tpu.memory_space<vmem>>, vector<1x1xf32>
    %20 = vector.broadcast %19 : vector<1x1xf32> to vector<1x256xf32>
    %21 = arith.addf %18, %20 : vector<1x256xf32>
    %cst_18 = arith.constant 0.000000e+00 : f32
    %22 = vector.broadcast %cst_18 : f32 to vector<1x256xf32>
    %23 = arith.subf %22, %21 : vector<1x256xf32>
    %24 = math.exp %23 : vector<1x256xf32>
    %cst_19 = arith.constant 1.000000e+00 : f32
    %25 = vector.broadcast %cst_19 : f32 to vector<1x256xf32>
    %26 = arith.addf %25, %24 : vector<1x256xf32>
    %27 = tpu.reciprocal %26 {approx = true} : vector<1x256xf32> -> vector<1x256xf32>
    %c0_20 = arith.constant 0 : index
    %c0_21 = arith.constant 0 : index
    %c0_22 = arith.constant 0 : index
    %28 = vector.load %arg3[%c0_20, %c0_21, %c0_22] : memref<1x4x256xf32, #tpu.memory_space<vmem>>, vector<1x4x256xf32>
    %29 = vector.shape_cast %28 : vector<1x4x256xf32> to vector<4x256xf32>
    %30 = vector.broadcast %27 : vector<1x256xf32> to vector<4x256xf32>
    %31 = arith.mulf %29, %30 : vector<4x256xf32>
    %c0_23 = arith.constant 0 : index
    %c0_24 = arith.constant 0 : index
    %c0_25 = arith.constant 0 : index
    %32 = vector.load %arg9[%c0_23, %c0_24, %c0_25] : memref<1x4x256xf32, #tpu.memory_space<vmem>>, vector<1x4x256xf32>
    %33 = vector.shape_cast %32 : vector<1x4x256xf32> to vector<4x256xf32>
    %34 = vector.shape_cast %31 : vector<4x256xf32> to vector<1x4x256xf32>
    tpu.vector_store %arg9[%c0_23, %c0_24, %c0_25], %34 {strides = array<i32>} : memref<1x4x256xf32, #tpu.memory_space<vmem>>, vector<1x4x256xf32>,
    return
  }
  func.func @transform_0(%arg0: i32, %arg1: i32) -> (i32, i32, i32) {
    %c0_i32 = arith.constant 0 : i32
    %c0_i32_0 = arith.constant 0 : i32
    return %arg0, %c0_i32, %arg1 : i32, i32, i32
  }
  func.func @transform_1(%arg0: i32, %arg1: i32) -> (i32, i32, i32) {
    %c0_i32 = arith.constant 0 : i32
    %c0_i32_0 = arith.constant 0 : i32
    return %arg0, %c0_i32, %arg1 : i32, i32, i32
  }
  func.func @transform_2(%arg0: i32, %arg1: i32) -> (i32, i32) {
    %c0_i32 = arith.constant 0 : i32
    %c0_i32_0 = arith.constant 0 : i32
    %c0_i32_1 = arith.constant 0 : i32
    return %c0_i32, %c0_i32_0 : i32, i32
  }
  func.func @transform_3(%arg0: i32, %arg1: i32) -> (i32, i32) {
    %c0_i32 = arith.constant 0 : i32
    %c0_i32_0 = arith.constant 0 : i32
    %c0_i32_1 = arith.constant 0 : i32
    return %c0_i32, %c0_i32_0 : i32, i32
  }
  func.func @transform_4(%arg0: i32, %arg1: i32) -> (i32, i32) {
    %c0_i32 = arith.constant 0 : i32
    %c0_i32_0 = arith.constant 0 : i32
    %c0_i32_1 = arith.constant 0 : i32
    return %c0_i32, %c0_i32_0 : i32, i32
  }
  func.func @transform_5(%arg0: i32, %arg1: i32) -> (i32, i32) {
    %c0_i32 = arith.constant 0 : i32
    %c0_i32_0 = arith.constant 0 : i32
    %c0_i32_1 = arith.constant 0 : i32
    return %c0_i32, %c0_i32_0 : i32, i32
  }
  func.func @transform_6(%arg0: i32, %arg1: i32) -> (i32, i32) {
    %c0_i32 = arith.constant 0 : i32
    %c0_i32_0 = arith.constant 0 : i32
    %c0_i32_1 = arith.constant 0 : i32
    return %c0_i32, %c0_i32_0 : i32, i32
  }
  func.func @transform_7(%arg0: i32, %arg1: i32) -> (i32, i32, i32) {
    %c0_i32 = arith.constant 0 : i32
    %c0_i32_0 = arith.constant 0 : i32
    return %arg0, %c0_i32, %arg1 : i32, i32, i32
  }
}

</mosaic_0001>

<bundles_post_ra>
// kernel: tpu_custom_call.1
= control target key start
LH: loop header
LB: loop body
LE: loop exit
PB: predicated region body
PF: predicated region fallthrough
CT: control target
= control target key end

     0   :  { %s1620_s0 = inlined_call_operand.hbm [shape: f32[2,4,256], index: 0, kind: input, shape index: {}]   ;;  %s1621_s1 = inlined_call_operand.hbm [shape: f32[2,4,256], index: 1, kind: input, shape index: {}]   ;;  %s1622_s2 = inlined_call_operand.hbm [shape: f32[8,4], index: 2, kind: input, shape index: {}]   ;;  %s1623_s3 = inlined_call_operand.hbm [shape: f32[8,4], index: 3, kind: input, shape index: {}]   ;;  %s1624_s4 = inlined_call_operand.hbm [shape: f32[8,1], index: 4, kind: input, shape index: {}]   ;;  %s1625_s5 = inlined_call_operand.hbm [shape: f32[8,1], index: 5, kind: input, shape index: {}]   ;;  %s1626_s6 = inlined_call_operand.<no memory space> [shape: f32[1,1], index: 6, kind: input, shape index: {}]   ;;  %s1627_s7 = inlined_call_operand.hbm [shape: f32[2,4,256], index: 7, kind: output, shape index: {}]  }
   0x1   :  { %1633 = sst [smem:[#allocation22_spill]] %s1622_s2  ;;  %v12_v0 = vstv %s1626_s6 }
   0x2   :  { %1634 = sst [smem:[#allocation23_spill]] %s1623_s3  ;;  %13 = vst [vmem:[#allocation2] sm:$0x1] %v12_v0 }
   0x3   :  { %1635 = sst [smem:[#allocation24_spill]] %s1624_s4 }
   0x4   :  { %1636 = sst [smem:[#allocation25_spill]] %s1625_s5 }
   0x5   :  { %14 = vsyncpa [#allocation4], 0 }
   0x6   :  { %16 = vsyncpa [#allocation4 + $0x1], 0 }
   0x7   :  { %17 = vsyncpa [#allocation7], 0 }
   0x8   :  { %19 = vsyncpa [#allocation7 + $0x1], 0 }
   0x9   :  { %20 = vsyncpa [#allocation10], 0 }
   0xa   :  { %21 = vsyncpa [#allocation13], 0 }
   0xb   :  { %22 = vsyncpa [#allocation5], 0 }
   0xc   :  { %24 = vsyncpa [#allocation5 + $0x1], 0  ;;  %s1283_s26 = smov 0   ;;  %s1285_s27 = smov 0  }
   0xd   :  { %s1287_s28 = smov 0   ;;  %s1289_s29 = smov 0  }
   0xe   :  { %s1291_s30 = smov 0   ;;  %s1293_s6 = smov 0  }
   0xf LB: > { %s1314_s8 = sadd.s32 4294967295, %s1229_s6   ;;  %p801_p0 = scmp.ge.s32.totalorder %s1229_s6, 1  ;;  %s1229_s6 = sphi %s1293_s6, %s30_s6   ;;  %s1225_s30 = sphi %s1291_s30, %s1667_s30   ;;  %s1221_s29 = sphi %s1289_s29, %s1666_s29   ;;  %s1217_s28 = sphi %s1287_s28, %s1665_s28   ;;  %s1213_s27 = sphi %s1285_s27, %s1664_s27   ;;  %s1209_s26 = sphi %s1283_s26, %s1663_s26  }
  0x10   : > { %p1628_p1 = scmp.eq.s32.totalorder %s1314_s8, 0  ;;  %p236_p2 = scmp.lt.s32.totalorder %s1229_s6, 3 }
  0x11   : > { %s1231_s10 = smov [#allocation8]   ;;  %s1232_s12 = smov [#allocation9]  }
  0x12   : > { %p1319_p3 = pnand %p801_p0, %p236_p2  ;;  %s249_s11 = sshll.u32 %s1231_s10, 4  ;;  %s250_s11 = int_to_ptr.vmem [resolvable:$true] %s249_s11 }
  0x13   : > { %s260_s13 = sshll.u32 %s1232_s12, 4  ;;  %s1233_s15 = smov [#allocation11]   ;;  %s1332_s13 = int_to_ptr.vmem [resolvable:$true] %s260_s13 }
  0x14   : > { %s1637_s9 = scalar_select %p1319_p3, 1, 0 }
  0x15   : > { %p859_p5 = pneg %p1319_p3  ;;  %s271_s16 = sshll.u32 %s1233_s15, 4  ;;  %s1334_s16 = int_to_ptr.vmem [resolvable:$true] %s271_s16 }
  0x16   : > { %s1639_s2 = sld [smem:[#allocation22_spill]] }
  0x17   : > { %p1328_p6 = pnand %p859_p5, %p1628_p1 }
  0x19   : > { %p1344_p8 = pneg %p1328_p6 }
  0x1c   : > { %s959_s19 = scalar_lea.hbm %s1639_s2, 128 }
  0x1d   : > { %p960_p7 = scmp.ne.s32.totalorder %s1639_s2, %s959_s19  ;;  %p966_p11 = scmp.lt.u32.totalorder %s959_s19, %s1639_s2 }
  0x1f   : > { %p962_p9 = pnand %p1344_p8, %p960_p7 }
  0x21   : > { %p963_p10 = pneg %p962_p9 }
  0x23   : > { %p968_p12 = pnand %p966_p11, %p963_p10 }
  0x25   : > { %971 = shalt.err (!%p968_p12)
}
  0x26   : > { %s972_s25 = scalar_lea.vmem %s250_s11, 128  ;;  %p980_p5 = scmp.lt.s32.totalorder %s250_s11, %s250_s11 }
  0x27   : > { %p973_p13 = scmp.ne.s32.totalorder %s250_s11, %s972_s25  ;;  %p981_p4 = scmp.lt.s32.totalorder %s972_s25, %s972_s25 }
  0x29   : > { %p975_p0 = pnand %p973_p13, %p1344_p8  ;;  %p982_p1 = por %p981_p4, %p980_p5 }
  0x2b   : > { %p976_p2 = pneg %p975_p0 }
  0x2d   : > { %p983_p3 = pnand %p982_p1, %p976_p2 }
  0x2f   : > { %986 = shalt.err (!%p983_p3)
}
  0x30   : > { %862 = dma.hbm_to_vmem [thread:$0]  (!%p1328_p6), %s1639_s2, 128, %s250_s11, [#allocation7]  }
  0x31   : > { %s1641_s3 = sld [smem:[#allocation23_spill]] }
  0x37   : > { %s987_s18 = scalar_lea.hbm %s1641_s3, 128 }
  0x38   : > { %p988_p7 = scmp.ne.s32.totalorder %s1641_s3, %s987_s18  ;;  %p994_p1 = scmp.lt.u32.totalorder %s987_s18, %s1641_s3 }
  0x3a   : > { %p990_p9 = pnand %p988_p7, %p1344_p8 }
  0x3c   : > { %p991_p4 = pneg %p990_p9 }
  0x3e   : > { %p996_p3 = pnand %p994_p1, %p991_p4 }
  0x40   : > { %999 = shalt.err (!%p996_p3)
}
  0x41   : > { %s1000_s11 = scalar_lea.vmem %s1332_s13, 128  ;;  %p1008_p13 = scmp.lt.s32.totalorder %s1332_s13, %s1332_s13 }
  0x42   : > { %p1001_p10 = scmp.ne.s32.totalorder %s1332_s13, %s1000_s11  ;;  %p1009_p0 = scmp.lt.s32.totalorder %s1000_s11, %s1000_s11 }
  0x44   : > { %p1003_p11 = pnand %p1001_p10, %p1344_p8  ;;  %p1010_p2 = por %p1009_p0, %p1008_p13 }
  0x46   : > { %p1004_p12 = pneg %p1003_p11 }
  0x48   : > { %p1011_p5 = pnand %p1010_p2, %p1004_p12 }
  0x4a   : > { %1014 = shalt.err (!%p1011_p5)
}
  0x4b   : > { %865 = dma.hbm_to_vmem [thread:$0]  (!%p1328_p6), %s1641_s3, 128, %s1332_s13, [#allocation10]  }
  0x4c   : > { %s1642_s4 = sld [smem:[#allocation24_spill]] }
  0x52   : > { %s1015_s15 = scalar_lea.hbm %s1642_s4, 128 }
  0x53   : > { %p1016_p7 = scmp.ne.s32.totalorder %s1642_s4, %s1015_s15  ;;  %p1022_p1 = scmp.lt.u32.totalorder %s1015_s15, %s1642_s4 }
  0x55   : > { %p1018_p9 = pnand %p1016_p7, %p1344_p8 }
  0x57   : > { %p1019_p4 = pneg %p1018_p9 }
  0x59   : > { %p1024_p3 = pnand %p1022_p1, %p1019_p4 }
  0x5b   : > { %1027 = shalt.err (!%p1024_p3)
}
  0x5c   : > { %s1028_s13 = scalar_lea.vmem %s1334_s16, 128  ;;  %p1036_p13 = scmp.lt.s32.totalorder %s1334_s16, %s1334_s16 }
  0x5d   : > { %p1029_p10 = scmp.ne.s32.totalorder %s1334_s16, %s1028_s13  ;;  %p1037_p0 = scmp.lt.s32.totalorder %s1028_s13, %s1028_s13 }
  0x5f   : > { %p1031_p11 = pnand %p1029_p10, %p1344_p8  ;;  %p1038_p2 = por %p1037_p0, %p1036_p13 }
  0x61   : > { %p1032_p12 = pneg %p1031_p11 }
  0x63   : > { %p1039_p5 = pnand %p1038_p2, %p1032_p12 }
  0x65   : > { %1042 = shalt.err (!%p1039_p5)
}
  0x66   : > { %868 = dma.hbm_to_vmem [thread:$0]  (!%p1328_p6), %s1642_s4, 128, %s1334_s16, [#allocation10]  }
  0x67   : > { %s1234_s11 = smov [#allocation12]   ;;  %s1643_s5 = sld [smem:[#allocation25_spill]] }
  0x68   : > { %s282_s24 = sshll.u32 %s1234_s11, 4  ;;  %s283_s24 = int_to_ptr.vmem [resolvable:$true] %s282_s24 }
  0x6d   : > { %s1043_s12 = scalar_lea.hbm %s1643_s5, 128 }
  0x6e   : > { %p1044_p7 = scmp.ne.s32.totalorder %s1643_s5, %s1043_s12  ;;  %p1050_p1 = scmp.lt.u32.totalorder %s1043_s12, %s1643_s5 }
  0x70   : > { %p1046_p9 = pnand %p1044_p7, %p1344_p8 }
  0x72   : > { %p1047_p4 = pneg %p1046_p9 }
  0x74   : > { %p1052_p3 = pnand %p1050_p1, %p1047_p4 }
  0x76   : > { %1055 = shalt.err (!%p1052_p3)
}
  0x77   : > { %s1056_s16 = scalar_lea.vmem %s283_s24, 128  ;;  %p1064_p13 = scmp.lt.s32.totalorder %s283_s24, %s283_s24 }
  0x78   : > { %p1057_p10 = scmp.ne.s32.totalorder %s283_s24, %s1056_s16  ;;  %p1065_p0 = scmp.lt.s32.totalorder %s1056_s16, %s1056_s16 }
  0x7a   : > { %p1059_p11 = pnand %p1057_p10, %p1344_p8  ;;  %p1066_p2 = por %p1065_p0, %p1064_p13 }
  0x7c   : > { %p1060_p12 = pneg %p1059_p11 }
  0x7e   : > { %p1067_p5 = pnand %p1066_p2, %p1060_p12 }
  0x80   : > { %1070 = shalt.err (!%p1067_p5)
}
  0x81   : > { %871 = dma.hbm_to_vmem [thread:$0]  (!%p1328_p6), %s1643_s5, 128, %s283_s24, [#allocation13]  }
  0x82   : > { %s800_s22 = sadd.s32 4294967294, %s1229_s6   ;;  %s42_s21 = sadd.s32 1, %s1225_s30 }
  0x83   : > { %p44_p8 = scmp.ge.s32.totalorder %s42_s21, 2  ;;  %s51_s14 = sadd.s32 1, %s1217_s28 }
  0x84   : > { %p58_p7 = scmp.ne.s32.totalorder %s1217_s28, %s1213_s27  ;;  %p59_p9 = scmp.eq.s32.totalorder %s1229_s6, 0 }
  0x85   : > { %s1669_s21 = smov (%p44_p8, %s42_s21), 0  ;;  %p64_p1 = scmp.ne.s32.totalorder %s1213_s27, %s1209_s26 }
  0x86   : > { %1644 = sst [smem:[#allocation21_spill]] %s1669_s21  ;;  %p1432_p4 = por %p59_p9, %p58_p7 }
  0x87   : > { %s46_s11 = ssub.s32 %s1225_s30, %s1669_s21  ;;  %p223_p6 = scmp.eq.s32.totalorder %s1314_s8, 1 }
  0x88   : > { %p49_p3 = scmp.eq.s32.totalorder %s46_s11, 0  ;;  %p1646_p10 = scmp.eq.s32.totalorder %s1314_s8, 0 }
  0x89   : > { %p1447_p12 = por %p223_p6, %p58_p7  ;;  %p229_p13 = scmp.eq.s32.totalorder %s800_s22, 1 }
  0x8a   : > { %p1443_p11 = por %p1646_p10, %p64_p1  ;;  %p887_p2 = scmp.lt.s32.totalorder %s1229_s6, 2 }
  0x8b   : > { %s1648_s25 = scalar_select %p1447_p12, 1, 0 }
  0x8c   : > { %s1647_s24 = scalar_select %p1443_p11, 1, 0 }
  0x8d   : > { %s1452_s10 = scalar_select %p49_p3, %s1217_s28, %s51_s14  }
  0x8e   : > { %p1454_p0 = por %p229_p13, %p64_p1  ;;  %s296_s15 = sand.u32 1, %s1217_s28  }
  0x8f   : > { %s832_s17 = sshll.u32 %s1225_s30, 7  ;;  %s1461_s18 = sshll.u32 %s296_s15, 3 }
  0x90   : > { %s1649_s12 = scalar_select %p1454_p0, 1, 0 }
  0x91   : > { %s1466_s20 = scalar_lea.hbm %s1620_s0, %s832_s17  ;;  %s300_s13 = scalar_lea.vmem [#allocation3], %s1461_s18 }
  0x92   : > { %s310_s22 = sshll.u32 %s300_s13, 4  ;;  %p1471_p5 = pnand %p887_p2, %p1432_p4  ;;  %s1475_s22 = int_to_ptr.vmem [resolvable:$true] %s310_s22 }
  0x93   : > { %s1480_s16 = scalar_lea.hbm %s1621_s1, %s832_s17  ;;  %s297_s2 = scalar_lea.sflag [#allocation4], %s296_s15 }
  0x94   : > { %s1071_s3 = scalar_lea.hbm %s1466_s20, 128  ;;  %p1073_p7 = pneg %p1471_p5 }
  0x95   : > { %p1072_p8 = scmp.ne.s32.totalorder %s1466_s20, %s1071_s3  ;;  %s1076_s4 = scalar_lea.hbm %s1620_s0, 256 }
  0x96   : > { %p1077_p1 = scmp.lt.u32.totalorder %s1466_s20, %s1620_s0  ;;  %p1078_p6 = scmp.lt.u32.totalorder %s1076_s4, %s1071_s3 }
  0x97   : > { %p1074_p9 = pnand %p1073_p7, %p1072_p8  ;;  %p1080_p10 = scmp.lt.u32.totalorder %s1071_s3, %s1466_s20 }
  0x98   : > { %p1079_p3 = por %p1078_p6, %p1077_p1 }
  0x99   : > { %p1075_p4 = pneg %p1074_p9 }
  0x9a   : > { %p1081_p13 = por %p1080_p10, %p1079_p3 }
  0x9c   : > { %p1082_p2 = pnand %p1081_p13, %p1075_p4 }
  0x9e   : > { %1085 = shalt.err (!%p1082_p2)
}
  0x9f   : > { %s1086_s15 = scalar_lea.vmem %s1475_s22, 128  ;;  %s1235_s17 = smov [#allocation3]  }
  0xa0   : > { %p1087_p8 = scmp.ne.s32.totalorder %s1475_s22, %s1086_s15  ;;  %s1091_s11 = sshll.u32 %s1235_s17, 4  ;;  %s1092_s11 = int_to_ptr.vmem [resolvable:$false] %s1091_s11 }
  0xa1   : > { %s1093_s5 = scalar_lea.vmem %s1092_s11, 256  ;;  %p1094_p12 = scmp.lt.s32.totalorder %s1475_s22, %s1092_s11 }
  0xa2   : > { %p1089_p9 = pnand %p1087_p8, %p1073_p7  ;;  %p1095_p1 = scmp.lt.s32.totalorder %s1093_s5, %s1086_s15 }
  0xa4   : > { %p1090_p0 = pneg %p1089_p9  ;;  %p1096_p6 = por %p1095_p1, %p1094_p12 }
  0xa6   : > { %p1097_p3 = pnand %p1096_p6, %p1090_p0 }
  0xa8   : > { %1100 = shalt.err (!%p1097_p3)
}
  0xa9   : > { %875 = dma.hbm_to_vmem [thread:$0]  (!%p1471_p5), %s1466_s20, 128, %s1475_s22, %s297_s2  }
  0xaa   : > { %s317_s3 = sand.u32 1, %s1229_s6   ;;  %s321_s4 = scalar_lea.vmem [#allocation6], %s1461_s18 }
  0xab   : > { %s331_s21 = sshll.u32 %s321_s4, 4  ;;  %s318_s19 = scalar_lea.sflag [#allocation7], %s317_s3  ;;  %s332_s21 = int_to_ptr.vmem [resolvable:$true] %s331_s21 }
  0xac   : > { %s1101_s23 = scalar_lea.hbm %s1480_s16, 128  ;;  %s1106_s17 = scalar_lea.hbm %s1621_s1, 256 }
  0xad   : > { %p1102_p12 = scmp.ne.s32.totalorder %s1480_s16, %s1101_s23  ;;  %p1107_p10 = scmp.lt.u32.totalorder %s1480_s16, %s1621_s1 }
  0xae   : > { %p1108_p13 = scmp.lt.u32.totalorder %s1106_s17, %s1101_s23  ;;  %p1110_p8 = scmp.lt.u32.totalorder %s1101_s23, %s1480_s16 }
  0xaf   : > { %p1104_p0 = pnand %p1102_p12, %p1073_p7 }
  0xb0   : > { %p1109_p2 = por %p1108_p13, %p1107_p10 }
  0xb1   : > { %p1105_p4 = pneg %p1104_p0 }
  0xb2   : > { %p1111_p9 = por %p1110_p8, %p1109_p2 }
  0xb4   : > { %p1112_p1 = pnand %p1111_p9, %p1105_p4 }
  0xb6   : > { %1115 = shalt.err (!%p1112_p1)
}
  0xb7   : > { %s1116_s2 = scalar_lea.vmem %s332_s21, 128  ;;  %s1236_s18 = smov [#allocation6]  }
  0xb8   : > { %p1117_p6 = scmp.ne.s32.totalorder %s332_s21, %s1116_s2  ;;  %s1121_s20 = sshll.u32 %s1236_s18, 4  ;;  %s1122_s20 = int_to_ptr.vmem [resolvable:$false] %s1121_s20 }
  0xb9   : > { %s1123_s22 = scalar_lea.vmem %s1122_s20, 256  ;;  %p1124_p0 = scmp.lt.s32.totalorder %s332_s21, %s1122_s20 }
  0xba   : > { %p1119_p3 = pnand %p1117_p6, %p1073_p7  ;;  %p1125_p11 = scmp.lt.s32.totalorder %s1123_s22, %s1116_s2 }
  0xbc   : > { %p1120_p12 = pneg %p1119_p3  ;;  %p1126_p10 = por %p1125_p11, %p1124_p0 }
  0xbe   : > { %p1127_p13 = pnand %p1126_p10, %p1120_p12 }
  0xc0   : > { %1130 = shalt.err (!%p1127_p13)
}
  0xc1   : > { %878 = dma.hbm_to_vmem [thread:$0]  (!%p1471_p5), %s1480_s16, 128, %s332_s21, %s318_s19  }
  0xc2   : > { %p1651_p4 = scmp.ne.s32.totalorder %s1637_s9, 0 }
  0xc3   : > { %s1531_s3 = sand.u32 (!%p1651_p4), 1, %s1213_s27   ;;  %p1652_p11 = scmp.ne.s32.totalorder (!%p1651_p4), %s1647_s24, 0 }
  0xc4   : > { %340 = sbr.rel (%p1651_p4) target bundleno = 503 (0x1f7), region = 48  ;;  %s1534_s4 = sshll.u32 (!%p1651_p4), %s1531_s3, 3 }
  0xc5   : > { %s343_s23 = scalar_lea.sflag (!%p1651_p4), [#allocation4], %s1531_s3  ;;  %s346_s13 = scalar_lea.vmem (!%p1651_p4), [#allocation3], %s1534_s4 }
  0xcb   : > { %1184 = dma.done.wait (%p1652_p11), %s343_s23, 128  }
  0xcc   : > { %1186 = vsyncadd (%p1652_p11), %s343_s23, 4294967168  ;;  %s351_s9 = sand.u32 1, %s1314_s8   ;;  %s355_s16 = scalar_lea.vmem [#allocation6], %s1534_s4 }
  0xcd   : > { %s352_s14 = scalar_lea.sflag [#allocation7], %s351_s9 }
  0xce   : > { %1188 = dma.done.wait (%p1652_p11), %s352_s14, 128  }
  0xcf   : > { %1190 = vsyncadd (%p1652_p11), %s352_s14, 4294967168  ;;  %p1653_p5 = scmp.eq.s32.totalorder %s1314_s8, 0 }
  0xd1   : > { %1192 = dma.done.wait (%p1653_p5), [#allocation7], 128   ;;  %p1654_p7 = pmov %p1653_p5 }
  0xd2   : > { %p1655_p2 = pmov %p1653_p5 }
  0xd3   : > { %1194 = vsyncadd (%p1654_p7), [#allocation7], 4294967168 }
  0xd4   : > { %1196 = dma.done.wait (%p1655_p2), [#allocation10], 256   ;;  %p1656_p8 = pmov %p1655_p2 }
  0xd5   : > { %p1657_p9 = pmov %p1655_p2 }
  0xd6   : > { %1198 = vsyncadd (%p1656_p8), [#allocation10], 4294967040 }
  0xd7   : > { %1200 = dma.done.wait (%p1657_p9), [#allocation13], 128   ;;  %p1658_p1 = pmov %p1655_p2 }
  0xd8   : > { %v1237_v1 = vmov 0.0   ;;  %v1238_v2 = vmov 0   ;;  %v1560_v3 = vld [vmem:[%s355_s16] sm:$0xff]  ;;  %vm420_vm0 = vcmask 1043456   ;;  %v411_v4 = vld [vmem:[%s346_s13] sm:$0xff]  ;;  %vm416_vm1 = vcmask 31744  }
  0xd9   : > { %1202 = vsyncadd (%p1658_p1), [#allocation13], 4294967168  ;;  %489 = vmatprep.mubr.f32.mxu1 %v1237_v1  ;;  %569 = vmatprep.mubr.f32.mxu0 %v1237_v1  ;;  %v415_v5 = vcombine.high %v1560_v3, %v1560_v3  ;;  %v497_v6 = vcombine.high %v411_v4, %v411_v4  ;;  %v576_v7 = vld [vmem:[#allocation11] sm:$0xff]  ;;  %v412_v8 = vld [vmem:[#allocation9] sm:$0xff]  ;;  %v612_v22 = vlaneseq  ;;  %s834_s8 = sshll.u32 %s1221_s29, 7  ;;  %s406_s24 = scalar_lea.vmem [#allocation14], %s1534_s4 }
  0xda   : > { %947 = vset.pattern.permute.xlu0 %v1238_v2  ;;  %948 = vset.pattern.permute.xlu1 %v1238_v2  ;;  %v410_v9 = vld [vmem:[#allocation8] sm:$0xff]  ;;  %v586_v10 = vld [vmem:[#allocation12] sm:$0xff]  ;;  %s651_s21 = sshll.u32 %s406_s24, 4  ;;  %s1571_s17 = scalar_lea.hbm %s1627_s7, %s834_s8  ;;  %s1573_s21 = int_to_ptr.vmem [resolvable:$true] %s651_s21 }
  0xdb   : > { %579 = vperm.xlu0 %947, %v576_v7   ;;  %821 = vmatprep.subr.msk.mxu1 %vm420_vm0, %v415_v5  ;;  %v606_v11 = vld [vmem:[#allocation2] sm:$0x1]  ;;  %v613_v28 = vshrl.u32 %v612_v22, 7  ;;  %s635_s11 = scalar_lea.sflag [#allocation5], %s1531_s3  ;;  %s1131_s5 = scalar_lea.vmem %s1573_s21, 128 }
  0xdc   : > { %824 = vmatprep.subr.msk.mxu0 %vm420_vm0, %v497_v6  ;;  %822 = vmatpush1.msk.msra.mxu1 %vm420_vm0, %v1560_v3  ;;  %p1132_p6 = scmp.ne.s32.totalorder %s1573_s21, %s1131_s5  ;;  %p1659_p3 = scmp.ne.s32.totalorder %s1648_s25, 0 }
  0xdd   : > { %825 = vmatpush1.msk.msra.mxu0 %vm420_vm0, %v411_v4  ;;  %823 = vmatmul.mubr.msk.f32.vlgmr.msra.gmra.mrb[0].mxu1 %vm416_vm1, %v412_v8  ;;  %v614_v33 = vsub.s32 0, %v613_v28  ;;  %s1239_s29 = smov [#allocation14]  }
  0xde   : > { %826 = vmatmul.mubr.msk.f32.vlgmr.msra.gmra.mrb[0].mxu0 %vm416_vm1, %v410_v9  ;;  %609 = vperm.xlu1 %948, %v606_v11   ;;  %p1133_p12 = pnand %p1132_p6, %p1659_p3  ;;  %s1135_s2 = sshll.u32 %s1239_s29, 4  ;;  %s1136_s2 = int_to_ptr.vmem [resolvable:$false] %s1135_s2 }
  0xdf   : > { %589 = vperm.xlu0 %947, %v586_v10   ;;  %s1137_s18 = scalar_lea.vmem %s1136_s2, 256  ;;  %p1138_p10 = scmp.lt.s32.totalorder %s1573_s21, %s1136_s2 }
  0xe0   : > { %p1134_p0 = pneg %p1133_p12  ;;  %p1139_p13 = scmp.lt.s32.totalorder %s1137_s18, %s1131_s5 }
  0xe2   : > { %p1140_p4 = por %p1139_p13, %p1138_p10 }
  0xe4   : > { %p1141_p11 = pnand %p1140_p4, %p1134_p0 }
 0x15a   : > { %v580_v12 = vpop.permute.xlu0 %579 }
 0x15d   : > { %v610_v35 = vpop.permute.xlu1 %609 }
 0x15e   : > { %v590_v23 = vpop.permute.xlu0 %589  ;;  %v615_v39 = vrot.slane %v610_v35, %v614_v33 }
 0x1b0   : > { %v491_v13 = vpop.f32.mrb[0].mxu1 }
 0x1b1   : > { %v571_v14 = vpop.f32.mrb[0].mxu0  ;;  %v493_v16 = vpop.f32.mrb[1].mxu1 }
 0x1b2   : > { %v572_v15 = vadd.f32 %v571_v14, %v491_v13  ;;  %v573_v17 = vpop.f32.mrb[1].mxu0 }
 0x1b3   : > { %v574_v18 = vadd.f32 %v573_v17, %v493_v16 }
 0x1b4   : > { %v582_v19 = vadd.f32 %v580_v12, %v572_v15 }
 0x1b5   : > { %v583_v20 = vadd.f32 %v580_v12, %v574_v18 }
 0x1b6   : > { %v584_v21 = vmax.f32 %v582_v19, 0.0 }
 0x1b7   : > { %v585_v24 = vmax.f32 %v583_v20, 0.0 }
 0x1b8   : > { %v592_v25 = vmul.f32 %v590_v23, %v584_v21 }
 0x1b9   : > { %v593_v26 = vmul.f32 %v590_v23, %v585_v24 }
 0x1ba   : > { %v594_v27 = vrot.slane %v592_v25, 4 }
 0x1bb   : > { %v600_v29 = vrot.slane %v593_v26, 4 }
 0x1bc   : > { %v595_v30 = vadd.f32 %v594_v27, %v592_v25 }
 0x1bd   : > { %v601_v31 = vadd.f32 %v600_v29, %v593_v26 }
 0x1be   : > { %v596_v32 = vrot.slane %v595_v30, 2 }
 0x1bf   : > { %v602_v34 = vrot.slane %v601_v31, 2 }
 0x1c0   : > { %v597_v36 = vadd.f32 %v596_v32, %v595_v30 }
 0x1c1   : > { %v603_v37 = vadd.f32 %v602_v34, %v601_v31 }
 0x1c2   : > { %v598_v38 = vrot.slane %v597_v36, 1 }
 0x1c3   : > { %v604_v40 = vrot.slane %v603_v37, 1 }
 0x1c4   : > { %v599_v41 = vadd.f32 %v598_v38, %v597_v36 }
 0x1c5   : > { %v605_v42 = vadd.f32 %v604_v40, %v603_v37 }
 0x1c6   : > { %v616_v43 = vadd.f32 %v615_v39, %v599_v41 }
 0x1c7   : > { %v617_v44 = vadd.f32 %v615_v39, %v605_v42 }
 0x1c8   : > { %v618_v45 = vsub.f32 0.0, %v616_v43 }
 0x1c9   : > { %v619_v46 = vsub.f32 0.0, %v617_v44 }
 0x1ca   : > { %v620_v47 = vmul.f32 1.442695, %v618_v45 }
 0x1cb   : > { %v622_v48 = vmul.f32 1.442695, %v619_v46 }
 0x1cc   : > { %951 = vpow2.f32 %v620_v47 }
 0x1cd   : > { %953 = vpow2.f32 %v622_v48 }
 0x1d6   : > { %v952_v49 = vpop.eup %951 }
 0x1d7   : > { %v954_v50 = vpop.eup %953  ;;  %v624_v51 = vadd.f32 1.0, %v952_v49 }
 0x1d8   : > { %v625_v52 = vadd.f32 1.0, %v954_v50 }
 0x1d9   : > { %955 = vrcp.f32 %v624_v51 }
 0x1da   : > { %957 = vrcp.f32 %v625_v52 }
 0x1e3   : > { %v956_v53 = vpop.eup %955 }
 0x1e4   : > { %v958_v54 = vpop.eup %957 }
 0x1e5   : > { %v630_v55 = vcombine.low %v956_v53, %v958_v54 }
 0x1e7   : > { %v632_v56 = vmul.f32 %v630_v55, %v1560_v3 }
 0x1e9   : > { %633 = vst [vmem:[%s406_s24] sm:$0xff] %v632_v56 }
 0x1ea   : > { %1144 = shalt.err (!%p1141_p11)
}
 0x1eb   : > { %s1145_s20 = scalar_lea.hbm %s1571_s17, 128  ;;  %s1149_s4 = scalar_lea.hbm %s1627_s7, 256 }
 0x1ec   : > { %p1146_p5 = scmp.ne.s32.totalorder %s1571_s17, %s1145_s20  ;;  %p1150_p8 = scmp.lt.u32.totalorder %s1571_s17, %s1627_s7 }
 0x1ed   : > { %p1151_p9 = scmp.lt.u32.totalorder %s1149_s4, %s1145_s20  ;;  %p1153_p6 = scmp.lt.u32.totalorder %s1145_s20, %s1571_s17 }
 0x1ee   : > { %p1147_p7 = pnand %p1146_p5, %p1659_p3 }
 0x1ef   : > { %p1152_p1 = por %p1151_p9, %p1150_p8 }
 0x1f0   : > { %p1148_p2 = pneg %p1147_p7 }
 0x1f1   : > { %p1154_p12 = por %p1153_p6, %p1152_p1 }
 0x1f3   : > { %p1155_p0 = pnand %p1154_p12, %p1148_p2 }
 0x1f5   : > { %1158 = shalt.err (!%p1155_p0)
}
 0x1f6   : > { %857 = dma.vmem_to_hbm [thread:$0]  (%p1659_p3), %s1573_s21, 128, %s1571_s17, %s635_s11  }
 0x1f7 PF: > { %s663_s9 = sand.u32 1, %s1209_s26   ;;  %p1660_p10 = scmp.ne.s32.totalorder %s1649_s12, 0 }
 0x1f8   : > { %p1661_p13 = scmp.ge.s32.totalorder %s1229_s6, 2  ;;  %s664_s14 = scalar_lea.sflag [#allocation5], %s663_s9 }
 0x1fa   : > { %p880_p4 = pnand %p1661_p13, %p1660_p10 }
 0x1fc   : > { %1204 = dma.done.wait (!%p880_p4), %s664_s14, 128  }
 0x1fd   : > { %1206 = vsyncadd (!%p880_p4), %s664_s14, 4294967168  ;;  %s30_s6 = sadd.s32 1, %s1229_s6   ;;  %s1662_s25 = sld [smem:[#allocation21_spill]] }
 0x1fe   : > { %p27_p11 = scmp.ge.s32.totalorder %s30_s6, 4   ;;  %s1663_s26 = smov %s1213_s27 }
 0x1ff   : > { %s1664_s27 = smov %s1217_s28  ;;  %s1665_s28 = smov %s1452_s10 }
 0x200   : > { %s1666_s29 = smov %s1225_s30  ;;  %29 = sbr.rel (!%p27_p11) target bundleno = 15 (0xf), region = 122 }
 0x203   : > { %s1667_s30 = smov %s1662_s25 }
 0x207   :  { %669 = vsyncpa [#allocation4], 1 }
 0x208   :  { %671 = vsyncpa [#allocation4 + $0x1], 1 }
 0x209   :  { %672 = vsyncpa [#allocation7], 1 }
 0x20a   :  { %674 = vsyncpa [#allocation7 + $0x1], 1 }
 0x20b   :  { %675 = vsyncpa [#allocation10], 1 }
 0x20c   :  { %676 = vsyncpa [#allocation13], 1 }
 0x20d   :  { %677 = vsyncpa [#allocation5], 1 }
 0x20e   :  { %679 = vsyncpa [#allocation5 + $0x1], 1 }

</bundles_post_ra>
